<compile_context>
chip_gen: v7x
topology: tpu7x:2x2x1
jax: 0.10.0
libtpu: 0.0.40
codegen_flags: <defaults>
</compile_context>

<pallas_src>
import numpy as np
import jax
import jax.numpy as jnp
from jax.experimental import pallas as pl
from jax.experimental.pallas import tpu as pltpu

# ---- S3IM hyper-parameters (mirrors S3IM.__init__, small demo patch) --------
KERNEL_SIZE = 4      # ssim window size
STRIDE      = 4      # ssim conv stride
REPEAT_TIME = 1      # number of (re-shuffled) virtual patch repeats
PATCH_H     = 16     # virtual patch height
PATCH_W     = 16     # virtual patch width
CHANNELS    = 3      # RGB
C1 = 0.01 ** 2
C2 = 0.03 ** 2

# Derived static geometry of the virtual patch / SSIM conv.
PAD = KERNEL_SIZE // 2
H   = PATCH_H
W   = PATCH_W * REPEAT_TIME
HP  = H + 2 * PAD                      # padded height
WP  = W + 2 * PAD                      # padded width
OH  = (HP - KERNEL_SIZE) // STRIDE + 1 # conv output height
OW  = (WP - KERNEL_SIZE) // STRIDE + 1 # conv output width
NQ  = 5                                # stacked conv inputs: x1, x2, x1^2, x2^2, x1*x2


def _gaussian_1d(window_size, sigma=1.5):
    xs = np.arange(window_size, dtype=np.float64)
    g = np.exp(-((xs - window_size // 2) ** 2) / (2.0 * sigma ** 2))
    return (g / g.sum()).astype(np.float32)


def _build_conv_operands():
    """Strided-Gaussian matmul operands (static for fixed hyper-params).

    gh_blk : (C*OH, C*HP)   block-diagonal over channels (depthwise row conv)
    gw_blk : (NQ*WP, NQ*OW) block-diagonal over the NQ lane-stacked quantities
    so that   gh_blk @ [q0|q1|...|q4] @ gw_blk == [conv(q0)|...|conv(q4)].
    """
    g = _gaussian_1d(KERNEL_SIZE)
    gh1 = np.zeros((OH, HP), np.float32)
    for o in range(OH):
        gh1[o, o * STRIDE:o * STRIDE + KERNEL_SIZE] = g
    gw1 = np.zeros((WP, OW), np.float32)
    for o in range(OW):
        gw1[o * STRIDE:o * STRIDE + KERNEL_SIZE, o] = g
    gh_blk = np.kron(np.eye(CHANNELS, dtype=np.float32), gh1)   # depthwise (channels)
    gw_blk = np.kron(np.eye(NQ, dtype=np.float32), gw1)         # per stacked quantity
    return jnp.asarray(gh_blk), jnp.asarray(gw_blk)


# Built once at import; closed over (constant-folded) by the jitted wrapper.
GH_BLK, GW_BLK = _build_conv_operands()


# ----------------------------- Pallas kernel ---------------------------------
def s3im_kernel(xs_ref, gh_ref, gw_ref, out_ref):
    """Fused SSIM hot path.

    xs_ref holds the five conv inputs stacked on the 128-lane axis:
        [x1 | x2 | x1*x1 | x2*x2 | x1*x2]     shape (C*HP, NQ*WP)
    so the depthwise strided-Gaussian conv of all five quantities is exactly
    two MXU matmuls, followed by the SSIM moment math, the map mean and the
    final  loss = 1 - mean  — all in-kernel.
    """
    xs = xs_ref[...]                                                   # (C*HP, NQ*WP)
    t = jnp.dot(gh_ref[...], xs, preferred_element_type=jnp.float32)   # (C*OH, NQ*WP)
    r = jnp.dot(t, gw_ref[...], preferred_element_type=jnp.float32)    # (C*OH, NQ*OW)

    # Static lane slices of the fused conv result: [mu1 | mu2 | E11 | E22 | E12]
    mu1 = r[:, 0 * OW:1 * OW]
    mu2 = r[:, 1 * OW:2 * OW]
    e11 = r[:, 2 * OW:3 * OW]
    e22 = r[:, 3 * OW:4 * OW]
    e12 = r[:, 4 * OW:5 * OW]

    mu1_sq = mu1 * mu1
    mu2_sq = mu2 * mu2
    mu12   = mu1 * mu2
    sigma1_sq = e11 - mu1_sq
    sigma2_sq = e22 - mu2_sq
    sigma12   = e12 - mu12

    num = (2.0 * mu12 + C1) * (2.0 * sigma12 + C2)
    den = (mu1_sq + mu2_sq + C1) * (sigma1_sq + sigma2_sq + C2)
    # Divide moved off the VALU via the reciprocal path; approx=False keeps the
    # result within the 1e-4 check against the f32 reference.
    ssim_map = num * pl.reciprocal(den, approx=False)                  # (C*OH, OW)

    total = jnp.sum(ssim_map, axis=1, keepdims=True)
    total = jnp.sum(total, axis=0, keepdims=True)                      # (1, 1)
    out_ref[...] = 1.0 - total * (1.0 / float(CHANNELS * OH * OW))     # loss = 1 - mean


# ----------------------------- glue / wrapper ---------------------------------
def _gather(src_vec, tar_vec):
    """S3IM index shuffle (torch: arange for i==0, randperm otherwise)."""
    if REPEAT_TIME == 1:
        return src_vec, tar_vec
    n = tar_vec.shape[0]
    idx = [jnp.arange(n)]
    for i in range(1, REPEAT_TIME):
        # TODO(synk): torch.randperm's RNG stream cannot be reproduced; thread a JAX key.
        idx.append(jax.random.permutation(jax.random.PRNGKey(i), n))
    res_index = jnp.concatenate(idx)
    return src_vec[res_index], tar_vec[res_index]


@jax.jit
def s3im_loss(src_vec, tar_vec):
    src_all, tar_all = _gather(src_vec, tar_vec)

    def to_slab(v):   # (N, C) rays -> zero-padded channel-major slab (C*HP, WP)
        img = v.T.reshape(CHANNELS, H, W)                      # NCHW (N=1 implicit)
        img = jnp.pad(img, ((0, 0), (PAD, PAD), (PAD, PAD)))
        return img.reshape(CHANNELS * HP, WP).astype(jnp.float32)

    x1 = to_slab(src_all)
    x2 = to_slab(tar_all)
    # Lane-dense operand prep (fused by XLA inside this same jit): the five conv
    # inputs are stacked along the lane axis so the kernel issues exactly two
    # MXU matmuls on a ~100-lane-dense operand.
    # TODO(synk): at production patch sizes move the product/stack and a
    # W/repeat-axis grid + ssim-sum accumulator into the kernel to bound VMEM
    # and avoid the extra HBM traffic of the three product slabs.
    xs = jnp.concatenate([x1, x2, x1 * x1, x2 * x2, x1 * x2], axis=1)   # (C*HP, NQ*WP)

    loss = pl.pallas_call(
        s3im_kernel,
        out_shape=jax.ShapeDtypeStruct((1, 1), jnp.float32),
        in_specs=[pl.BlockSpec(memory_space=pltpu.MemorySpace.VMEM)] * 3,
        out_specs=pl.BlockSpec(memory_space=pltpu.MemorySpace.VMEM),
    )(xs, GH_BLK, GW_BLK)
    return loss[0, 0]


# ----------------------------- pure-JAX reference -----------------------------
def s3im_loss_ref(src_vec, tar_vec):
    src_all, tar_all = _gather(src_vec, tar_vec)
    img1 = src_all.T.reshape(1, CHANNELS, H, W).astype(jnp.float32)
    img2 = tar_all.T.reshape(1, CHANNELS, H, W).astype(jnp.float32)
    g = _gaussian_1d(KERNEL_SIZE)
    win = jnp.asarray(
        np.broadcast_to(np.outer(g, g)[None, None],
                        (CHANNELS, 1, KERNEL_SIZE, KERNEL_SIZE)).copy())

    def conv(x):
        return jax.lax.conv_general_dilated(
            x, win, (STRIDE, STRIDE), [(PAD, PAD), (PAD, PAD)],
            feature_group_count=CHANNELS,
            dimension_numbers=('NCHW', 'OIHW', 'NCHW'))

    mu1, mu2 = conv(img1), conv(img2)
    mu1_sq, mu2_sq, mu12 = mu1 * mu1, mu2 * mu2, mu1 * mu2
    s1 = conv(img1 * img1) - mu1_sq
    s2 = conv(img2 * img2) - mu2_sq
    s12 = conv(img1 * img2) - mu12
    ssim_map = ((2 * mu12 + C1) * (2 * s12 + C2)) / (
        (mu1_sq + mu2_sq + C1) * (s1 + s2 + C2))
    return 1.0 - jnp.mean(ssim_map)


if __name__ == "__main__":
    key = jax.random.PRNGKey(0)
    k1, k2 = jax.random.split(key)
    n_rays = PATCH_H * PATCH_W                        # 256 rays
    src_vec = jax.random.uniform(k1, (n_rays, CHANNELS), dtype=jnp.float32)
    tar_vec = jax.random.uniform(k2, (n_rays, CHANNELS), dtype=jnp.float32)

    loss = jax.block_until_ready(s3im_loss(src_vec, tar_vec))
    ref = jax.block_until_ready(s3im_loss_ref(src_vec, tar_vec))

    assert np.isfinite(float(loss))
    assert abs(float(loss) - float(ref)) < 1e-4, (float(loss), float(ref))
    print("KERNEL_OK")
</pallas_src>

<mosaic_0001>
module attributes {stable_mosaic.version = 11 : i64} {
  func.func @s3im_kernel(%arg0: memref<60x100xf32, #tpu.memory_space<vmem>>, %arg1: memref<15x60xf32, #tpu.memory_space<vmem>>, %arg2: memref<100x25xf32, #tpu.memory_space<vmem>>, %arg3: memref<1x1xf32, #tpu.memory_space<vmem>>) attributes {dimension_semantics = [], scalar_prefetch = 0 : i64, scratch_operands = 0 : i64, tpu.core_type = #tpu.core_type<tc>} {
    %c0 = arith.constant 0 : index
    %c0_0 = arith.constant 0 : index
    %0 = vector.load %arg0[%c0, %c0_0] : memref<60x100xf32, #tpu.memory_space<vmem>>, vector<60x100xf32>
    %c0_1 = arith.constant 0 : index
    %c0_2 = arith.constant 0 : index
    %1 = vector.load %arg1[%c0_1, %c0_2] : memref<15x60xf32, #tpu.memory_space<vmem>>, vector<15x60xf32>
    %cst = arith.constant dense<0.000000e+00> : vector<15x100xf32>
    %2 = tpu.matmul %1, %0, %cst {dimension_numbers = #tpu.dot_dimension_numbers<[1], [0], [0], [1], [0, 0, 1, 1], [], []>} : vector<15x60xf32>, vector<60x100xf32>, vector<15x100xf32> -> vector<15x100xf32>
    %c0_3 = arith.constant 0 : index
    %c0_4 = arith.constant 0 : index
    %3 = vector.load %arg2[%c0_3, %c0_4] : memref<100x25xf32, #tpu.memory_space<vmem>>, vector<100x25xf32>
    %cst_5 = arith.constant dense<0.000000e+00> : vector<15x25xf32>
    %4 = tpu.matmul %2, %3, %cst_5 {dimension_numbers = #tpu.dot_dimension_numbers<[1], [0], [0], [1], [0, 0, 1, 1], [], []>} : vector<15x100xf32>, vector<100x25xf32>, vector<15x25xf32> -> vector<15x25xf32>
    %5 = vector.extract_strided_slice %4 {offsets = [0, 0], sizes = [15, 5], strides = [1, 1]} : vector<15x25xf32> to vector<15x5xf32>
    %6 = vector.extract_strided_slice %4 {offsets = [0, 5], sizes = [15, 5], strides = [1, 1]} : vector<15x25xf32> to vector<15x5xf32>
    %7 = vector.extract_strided_slice %4 {offsets = [0, 10], sizes = [15, 5], strides = [1, 1]} : vector<15x25xf32> to vector<15x5xf32>
    %8 = vector.extract_strided_slice %4 {offsets = [0, 15], sizes = [15, 5], strides = [1, 1]} : vector<15x25xf32> to vector<15x5xf32>
    %9 = vector.extract_strided_slice %4 {offsets = [0, 20], sizes = [15, 5], strides = [1, 1]} : vector<15x25xf32> to vector<15x5xf32>
    %10 = arith.mulf %5, %5 : vector<15x5xf32>
    %11 = arith.mulf %6, %6 : vector<15x5xf32>
    %12 = arith.mulf %5, %6 : vector<15x5xf32>
    %13 = arith.subf %7, %10 : vector<15x5xf32>
    %14 = arith.subf %8, %11 : vector<15x5xf32>
    %15 = arith.subf %9, %12 : vector<15x5xf32>
    %cst_6 = arith.constant 2.000000e+00 : f32
    %16 = vector.broadcast %cst_6 : f32 to vector<15x5xf32>
    %17 = arith.mulf %16, %12 : vector<15x5xf32>
    %cst_7 = arith.constant 9.99999974E-5 : f32
    %18 = vector.broadcast %cst_7 : f32 to vector<15x5xf32>
    %19 = arith.addf %17, %18 : vector<15x5xf32>
    %cst_8 = arith.constant 2.000000e+00 : f32
    %20 = vector.broadcast %cst_8 : f32 to vector<15x5xf32>
    %21 = arith.mulf %20, %15 : vector<15x5xf32>
    %cst_9 = arith.constant 8.99999984E-4 : f32
    %22 = vector.broadcast %cst_9 : f32 to vector<15x5xf32>
    %23 = arith.addf %21, %22 : vector<15x5xf32>
    %24 = arith.mulf %19, %23 : vector<15x5xf32>
    %25 = arith.addf %10, %11 : vector<15x5xf32>
    %cst_10 = arith.constant 9.99999974E-5 : f32
    %26 = vector.broadcast %cst_10 : f32 to vector<15x5xf32>
    %27 = arith.addf %25, %26 : vector<15x5xf32>
    %28 = arith.addf %13, %14 : vector<15x5xf32>
    %cst_11 = arith.constant 8.99999984E-4 : f32
    %29 = vector.broadcast %cst_11 : f32 to vector<15x5xf32>
    %30 = arith.addf %28, %29 : vector<15x5xf32>
    %31 = arith.mulf %27, %30 : vector<15x5xf32>
    %32 = tpu.reciprocal %31 : vector<15x5xf32> -> vector<15x5xf32>
    %33 = arith.mulf %24, %32 : vector<15x5xf32>
    %cst_12 = arith.constant dense<0.000000e+00> : vector<15xf32>
    %34 = vector.multi_reduction <add>, %33, %cst_12 [1] : vector<15x5xf32> to vector<15xf32>
    %35 = vector.shape_cast %34 : vector<15xf32> to vector<15x1xf32>
    %cst_13 = arith.constant dense<0.000000e+00> : vector<1xf32>
    %36 = vector.multi_reduction <add>, %35, %cst_13 [0] : vector<15x1xf32> to vector<1xf32>
    %37 = vector.shape_cast %36 : vector<1xf32> to vector<1x1xf32>
    %cst_14 = arith.constant 0.0133333337 : f32
    %38 = vector.broadcast %cst_14 : f32 to vector<1x1xf32>
    %39 = arith.mulf %37, %38 : vector<1x1xf32>
    %cst_15 = arith.constant 1.000000e+00 : f32
    %40 = vector.broadcast %cst_15 : f32 to vector<1x1xf32>
    %41 = arith.subf %40, %39 : vector<1x1xf32>
    %c0_16 = arith.constant 0 : index
    %c0_17 = arith.constant 0 : index
    %42 = vector.load %arg3[%c0_16, %c0_17] : memref<1x1xf32, #tpu.memory_space<vmem>>, vector<1x1xf32>
    tpu.vector_store %arg3[%c0_16, %c0_17], %41 {strides = array<i32>} : memref<1x1xf32, #tpu.memory_space<vmem>>, vector<1x1xf32>,
    return
  }
}

</mosaic_0001>

<bundles_post_ra>
// kernel: s3im_loss.1
= control target key start
LH: loop header
LB: loop body
LE: loop exit
PB: predicated region body
PF: predicated region fallthrough
CT: control target
= control target key end

     0   :  { %vm25_vm0 = vcmask 490496   ;;  %vm32_vm1 = vcmask 1043456   ;;  %s599_s0 = inlined_call_operand.vmem [shape: f32[60,100], index: 0, kind: input, shape index: {}]   ;;  %s600_s1 = inlined_call_operand.vmem [shape: f32[15,60], index: 1, kind: input, shape index: {}]   ;;  %s601_s2 = inlined_call_operand.vmem [shape: f32[100,25], index: 2, kind: input, shape index: {}]   ;;  %s602_s3 = inlined_call_operand.hbm [shape: f32[1,1], index: 3, kind: output, shape index: {}]  }
   0x1   :  { %v15_v0 = vld [vmem:[%s599_s0] sm:$0xff]  ;;  %v16_v1 = vld [vmem:[%s599_s0 + $0x8] sm:$0xff]  ;;  %v17_v2 = vld [vmem:[%s599_s0 + $0x10] sm:$0xff] }
   0x2   :  { %v409_v3 = vpack.c.bf16 %v16_v1, %v15_v0  ;;  %v18_v4 = vld [vmem:[%s599_s0 + $0x18] sm:$0xff]  ;;  %v19_v6 = vld [vmem:[%s599_s0 + $0x20] sm:$0xff]  ;;  %v20_v7 = vld [vmem:[%s599_s0 + $0x28] sm:$0xff] }
   0x3   :  { %v413_v5 = vpack.c.bf16 %v18_v4, %v17_v2  ;;  %v23_v8 = vld [vmem:[%s600_s1] sm:$0xff]  ;;  %v112_v10 = vld [vmem:[%s601_s2 + $0x8] sm:$0xff]  ;;  %v113_v11 = vld [vmem:[%s601_s2 + $0x10] sm:$0xff]  ;;  %v417_v13 = vpack.c.bf16 %v20_v7, %v19_v6 }
   0x4   :  { %410 = vmatprep.subr.bf16.mxu0 %v409_v3  ;;  %v111_v9 = vld [vmem:[%s601_s2] sm:$0xff]  ;;  %377 = vmatprep.mubr.msk.f32.mxu0 %vm25_vm0, %v23_v8  ;;  %v114_v12 = vld [vmem:[%s601_s2 + $0x18] sm:$0xff]  ;;  %v21_v14 = vld [vmem:[%s599_s0 + $0x30] sm:$0xff] }
   0x5   :  { %412 = vmatpush3.bf16.msra.mxu0 %v409_v3  ;;  %v427_v15 = vpack.c.bf16 %v112_v10, %v111_v9  ;;  %v431_v16 = vpack.c.bf16 %v114_v12, %v113_v11  ;;  %v22_v17 = vld [vmem:[%s599_s0 + $0x38] sm:$0xf]  ;;  %v115_v18 = vld [vmem:[%s601_s2 + $0x20] sm:$0xff]  ;;  %v116_v19 = vld [vmem:[%s601_s2 + $0x28] sm:$0xff] }
   0x6   :  { %414 = vmatprep.subr.bf16.mxu0 %v413_v5 }
   0x7   :  { %428 = vmatprep.subr.bf16.mxu1 %v427_v15 }
   0x8   :  { %8 = vsyncpa [#allocation3], 0  ;;  %430 = vmatpush3.bf16.msra.mxu1 %v427_v15  ;;  %v421_v20 = vpack.c.bf16 %v22_v17, %v21_v14  ;;  %v435_v21 = vpack.c.bf16 %v116_v19, %v115_v18  ;;  %vm486_vm2 = vmmov 1   ;;  %v117_v22 = vld [vmem:[%s601_s2 + $0x30] sm:$0xff]  ;;  %v118_v23 = vld [vmem:[%s601_s2 + $0x38] sm:$0xff]  ;;  %vm124_vm4 = vcmask 818176  }
   0x9   :  { %416 = vmatpush3.bf16.msra.mxu0 %v413_v5  ;;  %432 = vmatprep.subr.bf16.mxu1 %v431_v16  ;;  %vm422_vm3 = vmpackc.low %vm32_vm1, %vm486_vm2  ;;  %v439_v24 = vpack.c.bf16 %v118_v23, %v117_v22  ;;  %v119_v25 = vld [vmem:[%s601_s2 + $0x40] sm:$0xff]  ;;  %v120_v26 = vld [vmem:[%s601_s2 + $0x48] sm:$0xff]  ;;  %s487_s29 = smov 123   ;;  %s488_s30 = smov 10   ;;  %vm299_vm5 = vcmask 38912   ;;  %vm295_vm6 = vcmask 39936  }
   0xa   :  { %418 = vmatprep.subr.bf16.mxu0 %v417_v13  ;;  %v24_v27 = vld [vmem:[%s600_s1 + $0x8] sm:$0x7f]  ;;  %v443_v28 = vpack.c.bf16 %v120_v26, %v119_v25  ;;  %v121_v29 = vld [vmem:[%s601_s2 + $0x50] sm:$0xff]  ;;  %v122_v30 = vld [vmem:[%s601_s2 + $0x58] sm:$0xff]  ;;  %s490_s4 = smov 118   ;;  %s491_s5 = smov 108  }
   0xb   :  { %v447_v31 = vpack.c.bf16 %v122_v30, %v121_v29  ;;  %v123_v32 = vld [vmem:[%s601_s2 + $0x60] sm:$0xf]  ;;  %s489_s2 = smov 20   ;;  %vm303_vm7 = vcmask 1046528   ;;  %s492_s6 = smov [#allocation2]   ;;  %vm314_vm8 = vcmask 0  }
   0xc   :  { %434 = vmatpush3.bf16.msra.mxu1 %v431_v16  ;;  %s322_s7 = sshll.u32 %s492_s6, 4  ;;  %s323_s7 = int_to_ptr.vmem [resolvable:$true] %s322_s7 }
   0xd   :  { %420 = vmatpush3.bf16.msra.mxu0 %v417_v13  ;;  %436 = vmatprep.subr.bf16.mxu1 %v435_v21  ;;  %s462_s8 = scalar_lea.vmem %s323_s7, 16  ;;  %s466_s9 = scalar_lea.vmem %s323_s7, 32 }
   0xe   :  { %423 = vmatprep.subr.msk.bf16.mxu0 %vm422_vm3, %v421_v20  ;;  %p463_p0 = scmp.ne.s32.totalorder %s323_s7, %s462_s8  ;;  %p467_p1 = scmp.lt.s32.totalorder %s323_s7, %s323_s7 }
   0xf   :  { %p468_p2 = scmp.lt.s32.totalorder %s466_s9, %s462_s8 }
  0x10   :  { %438 = vmatpush3.bf16.msra.mxu1 %v435_v21 }
  0x11   :  { %426 = vmatpush3.bf16.msk.msra.mxu0 %vm422_vm3, %v421_v20  ;;  %440 = vmatprep.subr.bf16.mxu1 %v439_v24  ;;  %p469_p3 = por %p468_p2, %p467_p1 }
  0x13   :  { %p470_p4 = pnand %p469_p3, %p463_p0 }
  0x14   :  { %378 = vmatmul.mubr.msk.f32.vlgmr.msra.gmra.mrb[0].mxu0 %vm25_vm0, %v24_v27  ;;  %442 = vmatpush3.bf16.msra.mxu1 %v439_v24 }
  0x15   :  { %444 = vmatprep.subr.bf16.mxu1 %v443_v28 }
  0x18   :  { %446 = vmatpush3.bf16.msra.mxu1 %v443_v28 }
  0x19   :  { %448 = vmatprep.subr.bf16.mxu1 %v447_v31 }
  0x1c   :  { %450 = vmatpush3.bf16.msra.mxu1 %v447_v31 }
  0x1d   :  { %404 = vmatprep.subr.msk.mxu1 %vm32_vm1, %v123_v32 }
  0x20   :  { %405 = vmatpush3.msk.msra.mxu1 %vm32_vm1, %v123_v32 }
  0xe7   :  { %v379_v33 = vpop.f32.mrb[0].mxu0 }
  0xe8   :  { %v102_v34 = vpop.f32.mrb[1].mxu0 }
  0xe9   :  { %406 = vmatprep.mubr.msk.f32.mxu1 %vm124_vm4, %v102_v34 }
  0xea   :  { %407 = vmatmul.mubr.msk.f32.vlgmr.msra.gmra.mrb[0].mxu1 %vm124_vm4, %v379_v33 }
 0x1bd   :  { %v408_v35 = vpop.f32.mrb[0].mxu1 }
 0x1be   :  { %215 = vrot.lane.b32.xlu1 %v408_v35, %s487_s29  ;;  %v200_v36 = vpop.f32.mrb[1].mxu1  ;;  %v210_v37 = vmul.f32 %v408_v35, %v408_v35 }
 0x1bf   :  { %v209_v38 = vmul.f32 %v200_v36, %v200_v36 }
 0x1c0   :  { %225 = vrot.lane.b32.xlu0 %v210_v37, %s488_s30 }
 0x1c2   :  { %213 = vrot.lane.b32.xlu1 %v200_v36, %s487_s29 }
 0x1c4   :  { %223 = vrot.lane.b32.xlu0 %v209_v38, %s488_s30 }
 0x230   :  { %v216_v39 = vpop.permute.xlu1 %215 }
 0x231   :  { %v220_v43 = vmul.f32 %v408_v35, %v216_v39 }
 0x232   :  { %v226_v40 = vpop.permute.xlu0 %225 }
 0x233   :  { %v230_v41 = vsub.f32 %v408_v35, %v226_v40  ;;  %v242_v7 = vmul.f32 2.0, %v220_v43 }
 0x234   :  { %v214_v45 = vpop.permute.xlu1 %213 }
 0x235   :  { %273 = vrot.lane.b32.xlu0 %v230_v41, %s487_s29  ;;  %v219_v46 = vmul.f32 %v214_v45, %v200_v36  ;;  %v244_v10 = vadd.f32 0.0001, %v242_v7 }
 0x236   :  { %v224_v42 = vpop.permute.xlu0 %223 }
 0x237   :  { %v229_v44 = vsub.f32 %v200_v36, %v224_v42  ;;  %v241_v9 = vmul.f32 2.0, %v219_v46 }
 0x239   :  { %235 = vrot.lane.b32.xlu0 %v220_v43, %s489_s2  ;;  %271 = vrot.lane.b32.xlu1 %v229_v44, %s487_s29  ;;  %v243_v14 = vadd.f32 0.0001, %v241_v9 }
 0x23d   :  { %261 = vrot.lane.b32.xlu0 %v210_v37, %s487_s29  ;;  %233 = vrot.lane.b32.xlu1 %v219_v46, %s489_s2 }
 0x241   :  { %259 = vrot.lane.b32.xlu1 %v209_v38, %s487_s29 }
 0x2a7   :  { %v274_v47 = vpop.permute.xlu0 %273 }
 0x2a8   :  { %v278_v48 = vadd.f32 %v274_v47, %v230_v41 }
 0x2aa   :  { %v280_v49 = vadd.f32 0.0009, %v278_v48 }
 0x2ab   :  { %v272_v50 = vpop.permute.xlu1 %271  ;;  %v236_v51 = vpop.permute.xlu0 %235 }
 0x2ac   :  { %v277_v52 = vadd.f32 %v272_v50, %v229_v44  ;;  %v240_v53 = vsub.f32 %v408_v35, %v236_v51  ;;  %285 = vrot.lane.b32.xlu0 %v280_v49, %s490_s4 }
 0x2ae   :  { %v279_v54 = vadd.f32 0.0009, %v277_v52  ;;  %v246_v55 = vmul.f32 2.0, %v240_v53 }
 0x2af   :  { %v234_v56 = vpop.permute.xlu1 %233  ;;  %v262_v61 = vpop.permute.xlu0 %261 }
 0x2b0   :  { %v248_v57 = vadd.f32 0.0009, %v246_v55  ;;  %v239_v58 = vsub.f32 %v200_v36, %v234_v56  ;;  %283 = vrot.lane.b32.xlu1 %v279_v54, %s490_s4  ;;  %v266_v62 = vadd.f32 %v262_v61, %v210_v37 }
 0x2b2   :  { %v245_v59 = vmul.f32 2.0, %v239_v58  ;;  %253 = vrot.lane.b32.xlu0 %v248_v57, %s491_s5  ;;  %v268_v0 = vadd.f32 0.0001, %v266_v62 }
 0x2b3   :  { %v260_v63 = vpop.permute.xlu1 %259 }
 0x2b4   :  { %v247_v60 = vadd.f32 0.0009, %v245_v59  ;;  %v265_v1 = vadd.f32 %v260_v63, %v209_v38 }
 0x2b6   :  { %251 = vrot.lane.b32.xlu1 %v247_v60, %s491_s5  ;;  %v267_v4 = vadd.f32 0.0001, %v265_v1 }
 0x31e   :  { %v286_v2 = vpop.permute.xlu0 %285 }
 0x31f   :  { %v290_v3 = vmul.f32 %v286_v2, %v268_v0 }
 0x321   :  { %458 = vrcp.f32 %v290_v3 }
 0x322   :  { %v284_v5 = vpop.permute.xlu1 %283 }
 0x323   :  { %v289_v6 = vmul.f32 %v284_v5, %v267_v4 }
 0x324   :  { %v254_v8 = vpop.permute.xlu0 %253 }
 0x325   :  { %460 = vrcp.f32 %v289_v6  ;;  %v258_v11 = vmul.f32 %v254_v8, %v244_v10 }
 0x328   :  { %v252_v13 = vpop.permute.xlu1 %251 }
 0x329   :  { %v257_v16 = vmul.f32 %v252_v13, %v243_v14 }
 0x32b   :  { %v459_v12 = vpop.eup %458 }
 0x32c   :  { %v294_v15 = vmul.f32 %v459_v12, %v258_v11 }
 0x32e   :  { %v300_v17 = vsel %vm299_vm5, %v294_v15, 0.0 }
 0x32f   :  { %v461_v18 = vpop.eup %460  ;;  %301 = vadd.xlane.f32.xlu0 %v300_v17 }
 0x330   :  { %v293_v19 = vmul.f32 %v461_v18, %v257_v16 }
 0x332   :  { %v296_v20 = vsel %vm295_vm6, %v293_v19, 0.0 }
 0x333   :  { %297 = vadd.xlane.f32.xlu1 %v296_v20 }
 0x3bc   :  { %v302_v21 = vpop.xlane.xlu0 %301 }
 0x3bd   :  { %v304_v22 = vsel %vm303_vm7, %v302_v21, 0.0 }
 0x3c0   :  { %v298_v23 = vpop.xlane.xlu1 %297 }
 0x3c1   :  { %v305_v24 = vadd.f32 %v304_v22, %v298_v23 }
 0x3c3   :  { %v306_v25 = vrot.slane %v305_v24, 4 }
 0x3c5   :  { %v307_v26 = vadd.f32 %v306_v25, %v305_v24 }
 0x3c7   :  { %v308_v27 = vrot.slane %v307_v26, 2 }
 0x3c9   :  { %v309_v28 = vadd.f32 %v308_v27, %v307_v26 }
 0x3cb   :  { %v310_v29 = vrot.slane %v309_v28, 1 }
 0x3cd   :  { %v311_v30 = vadd.f32 %v310_v29, %v309_v28 }
 0x3cf   :  { %v312_v31 = vmul.f32 0.013333334, %v311_v30 }
 0x3d1   :  { %v313_v32 = vsub.f32 1.0, %v312_v31 }
 0x3d3   :  { %315 = vst.msk [vmem:[#allocation2] sm:$0x1] %vm314_vm8, %v313_v32 }
 0x3d4   :  { %473 = shalt.err (!%p470_p4)
}
 0x3d5   :  { %s474_s12 = scalar_lea.hbm %s602_s3, 16 }
 0x3d6   :  { %p475_p5 = scmp.ne.s32.totalorder %s602_s3, %s474_s12  ;;  %p478_p6 = scmp.lt.u32.totalorder %s474_s12, %s602_s3 }
 0x3d8   :  { %p480_p7 = pnand %p478_p6, %p475_p5 }
 0x3da   :  { %483 = shalt.err (!%p480_p7)
}
 0x3db   :  { %325 = dma.vmem_to_hbm [thread:$0]  %s323_s7, 16, %s602_s3, [#allocation3]  }
 0x3dc   :  { %484 = dma.done.wait [#allocation3], 16  }
 0x3dd   :  { %485 = vsyncadd [#allocation3], 4294967280 }
 0x3de   :  { %329 = vsyncpa [#allocation3], 1 }

</bundles_post_ra>
